<compile_context>
chip_gen: v7x
topology: tpu7x:2x2x1
jax: 0.10.0
libtpu: 0.0.40
codegen_flags: <defaults>
</compile_context>

<pallas_src>
import functools

import jax
import jax.numpy as jnp
from jax.experimental import pallas as pl
from jax.experimental.pallas import tpu as pltpu

LANES = 128     # vreg lane width
SUBLANES = 8    # f32 sublane count


def mlp_kernel(params_ref, x_ref, o_ref, *, hidden: int, compute_dtype):
    """Element-wise MLP over a lane-dense (block_rows, 128) batch tile.

    params_ref: SMEM f32[3*hidden + 1] packed as [w1 | b1 | w2 | b2].
    Each element of x_ref is one batch row (the input feature dim is 1), so
        y = sum_j tanh(x * w1[j] + b1[j]) * w2[j] + b2
    is pure VPU/EUP work -- no MXU matmuls.
    """
    x = x_ref[...].astype(compute_dtype)

    def p(i):  # scalar param load from SMEM (splatted by the compiler)
        return params_ref[i].astype(compute_dtype)

    # j = 0 term with b2 folded in (drops the zeros materialisation + one VALU add).
    acc = jnp.tanh(x * p(0) + p(hidden)) * p(2 * hidden) + p(3 * hidden)
    # Fully unrolled over the remaining hidden units: 14 EUP tanh pushes per vreg,
    # bounded live set (x, acc, one temp) -- EUP stays the binding slot.
    for j in range(1, hidden):
        acc = acc + jnp.tanh(x * p(j) + p(hidden + j)) * p(2 * hidden + j)

    o_ref[...] = acc.astype(o_ref.dtype)   # single lane-dense store per tile


def subclass_function_model(x, w1, b1, w2, b2, *,
                            max_block_rows: int = 4096,
                            min_pallas_batch: int = 1024,
                            core_parallel: bool = False,
                            compute_dtype=jnp.float32):
    """Forward pass of Linear(1->H) -> tanh -> Linear(H->1).

    x: (N, 1). Weights stored transposed vs PyTorch: w1 (1, H), b1 (1, H),
    w2 (H, 1), b2 (1, 1). Returns (N, 1).
    """
    hidden = int(w1.size)
    n = x.shape[0]
    out_dtype = x.dtype

    # Tiny batches: pallas_call fixed cost dominates one vreg of work -- use XLA.
    if n < min_pallas_batch:
        return (jnp.tanh(x.astype(jnp.float32) @ w1 + b1) @ w2 + b2).astype(out_dtype)

    # Pack the 3*H + 1 parameter floats into one small SMEM-resident buffer.
    params = jnp.concatenate(
        [w1.reshape(-1), b1.reshape(-1), w2.reshape(-1), b2.reshape(-1)]
    ).astype(jnp.float32)

    # Lane-dense layout: each batch element is one f32 lane of a (rows, 128) slab.
    if n % LANES == 0:
        rows = n // LANES
        x2d = x.reshape(rows, LANES)           # free bitcast: contiguous (N,1) -> (rows,128)
        padded = False
    else:
        # TODO(synk): non-128-multiple N still pays one pad + one slice HBM pass;
        # an in-kernel masked tail (1-D blocks + scalar-prefetched n) would remove it.
        rows = pl.cdiv(n, LANES)
        x2d = jnp.pad(x.reshape(-1), (0, rows * LANES - n)).reshape(rows, LANES)
        padded = True

    if rows <= max_block_rows:
        block_rows = rows                       # single block == full sublane extent (always legal)
    else:
        block_rows = max(SUBLANES, (max_block_rows // SUBLANES) * SUBLANES)
    grid = pl.cdiv(rows, block_rows)            # boundary row-block (if any) is masked by Pallas

    # CORE_PARALLEL splits the batch grid axis across v7x's two TensorCores.
    sem = pltpu.CORE_PARALLEL if core_parallel else "parallel"

    out2d = pl.pallas_call(
        functools.partial(mlp_kernel, hidden=hidden, compute_dtype=compute_dtype),
        out_shape=jax.ShapeDtypeStruct((rows, LANES), out_dtype),
        grid_spec=pltpu.PrefetchScalarGridSpec(
            num_scalar_prefetch=0,
            grid=(grid,),
            in_specs=[
                pl.BlockSpec(memory_space=pltpu.MemorySpace.SMEM),   # packed params (grid-invariant)
                pl.BlockSpec((block_rows, LANES), lambda i: (i, 0)),
            ],
            out_specs=pl.BlockSpec((block_rows, LANES), lambda i: (i, 0)),
        ),
        compiler_params=pltpu.CompilerParams(
            dimension_semantics=(sem,),
        ),
    )(params, x2d)

    if padded:
        return out2d.reshape(-1)[:n].reshape(n, 1).astype(out_dtype)
    return out2d.reshape(n, 1)


def init_params(key):
    # Deterministic init mimicking PyTorch nn.Linear default:
    # U(-1/sqrt(fan_in), 1/sqrt(fan_in)) for both weight and bias.
    k1, k2, k3, k4 = jax.random.split(key, 4)
    bound1 = 1.0 / jnp.sqrt(1.0)    # fan_in = 1
    bound2 = 1.0 / jnp.sqrt(14.0)   # fan_in = 14
    w1 = jax.random.uniform(k1, (1, 14), jnp.float32, -bound1, bound1)
    b1 = jax.random.uniform(k2, (1, 14), jnp.float32, -bound1, bound1)
    w2 = jax.random.uniform(k3, (14, 1), jnp.float32, -bound2, bound2)
    b2 = jax.random.uniform(k4, (1, 1), jnp.float32, -bound2, bound2)
    return w1, b1, w2, b2


if __name__ == "__main__":
    key = jax.random.PRNGKey(0)
    kx, kp = jax.random.split(key)
    w1, b1, w2, b2 = init_params(kp)

    def ref_fn(x):
        return jnp.tanh(x @ w1 + b1) @ w2 + b2

    # 1) Module-sized input (N=8): small-batch jnp fallback path.
    x_small = jax.random.normal(kx, (8, 1), jnp.float32)
    out_small = subclass_function_model(x_small, w1, b1, w2, b2)
    jax.block_until_ready(out_small)
    assert out_small.shape == (8, 1)
    assert jnp.allclose(out_small, ref_fn(x_small), atol=1e-5, rtol=1e-5)

    # 2) Same tiny input forced through the Pallas kernel (pad path, single (1,128) block).
    out_small_pk = subclass_function_model(x_small, w1, b1, w2, b2, min_pallas_batch=0)
    jax.block_until_ready(out_small_pk)
    assert out_small_pk.shape == (8, 1)
    assert jnp.allclose(out_small_pk, ref_fn(x_small), atol=1e-5, rtol=1e-5)

    # 3) 128-aligned batch: zero-copy wrapper path, multi-tile grid with a partial row-block.
    x_al = jax.random.normal(kx, (2560, 1), jnp.float32)   # rows=20, block_rows=8 -> grid=3 (last masked)
    out_al = subclass_function_model(x_al, w1, b1, w2, b2,
                                     max_block_rows=8, min_pallas_batch=0)
    jax.block_until_ready(out_al)
    assert out_al.shape == (2560, 1)
    assert jnp.allclose(out_al, ref_fn(x_al), atol=1e-5, rtol=1e-5)

    # 4) Non-aligned batch: pad path, multi-tile grid.
    x_un = jax.random.normal(kx, (3000, 1), jnp.float32)   # padded to rows=24, grid=3
    out_un = subclass_function_model(x_un, w1, b1, w2, b2,
                                     max_block_rows=8, min_pallas_batch=0)
    jax.block_until_ready(out_un)
    assert out_un.shape == (3000, 1)
    assert jnp.allclose(out_un, ref_fn(x_un), atol=1e-5, rtol=1e-5)

    print("KERNEL_OK")
</pallas_src>

<mosaic_0001>
module attributes {stable_mosaic.version = 11 : i64} {
  func.func @mlp_kernel(%arg0: i32, %arg1: memref<43xf32, #tpu.memory_space<smem>>, %arg2: memref<1x128xf32, #tpu.memory_space<vmem>>, %arg3: memref<1x128xf32, #tpu.memory_space<vmem>>) attributes {dimension_semantics = [#tpu.dimension_semantics<parallel>], iteration_bounds = array<i64: 1>, scalar_prefetch = 0 : i64, scratch_operands = 0 : i64, tpu.core_type = #tpu.core_type<tc>, window_params = [{transform_indices = @transform_0, window_bounds = array<i64: 43>}, {transform_indices = @transform_1, window_bounds = array<i64: 1, 128>}, {transform_indices = @transform_2, window_bounds = array<i64: 1, 128>}]} {
    %c0 = arith.constant 0 : index
    %c0_0 = arith.constant 0 : index
    %0 = vector.load %arg2[%c0, %c0_0] : memref<1x128xf32, #tpu.memory_space<vmem>>, vector<1x128xf32>
    %c0_1 = arith.constant 0 : index
    %1 = memref.load %arg1[%c0_1] : memref<43xf32, #tpu.memory_space<smem>>
    %2 = vector.broadcast %1 : f32 to vector<1x128xf32>
    %3 = arith.mulf %0, %2 : vector<1x128xf32>
    %c14 = arith.constant 14 : index
    %4 = memref.load %arg1[%c14] : memref<43xf32, #tpu.memory_space<smem>>
    %5 = vector.broadcast %4 : f32 to vector<1x128xf32>
    %6 = arith.addf %3, %5 : vector<1x128xf32>
    %7 = math.tanh %6 : vector<1x128xf32>
    %c28 = arith.constant 28 : index
    %8 = memref.load %arg1[%c28] : memref<43xf32, #tpu.memory_space<smem>>
    %9 = vector.broadcast %8 : f32 to vector<1x128xf32>
    %10 = arith.mulf %7, %9 : vector<1x128xf32>
    %c42 = arith.constant 42 : index
    %11 = memref.load %arg1[%c42] : memref<43xf32, #tpu.memory_space<smem>>
    %12 = vector.broadcast %11 : f32 to vector<1x128xf32>
    %13 = arith.addf %10, %12 : vector<1x128xf32>
    %c1 = arith.constant 1 : index
    %14 = memref.load %arg1[%c1] : memref<43xf32, #tpu.memory_space<smem>>
    %15 = vector.broadcast %14 : f32 to vector<1x128xf32>
    %16 = arith.mulf %0, %15 : vector<1x128xf32>
    %c15 = arith.constant 15 : index
    %17 = memref.load %arg1[%c15] : memref<43xf32, #tpu.memory_space<smem>>
    %18 = vector.broadcast %17 : f32 to vector<1x128xf32>
    %19 = arith.addf %16, %18 : vector<1x128xf32>
    %20 = math.tanh %19 : vector<1x128xf32>
    %c29 = arith.constant 29 : index
    %21 = memref.load %arg1[%c29] : memref<43xf32, #tpu.memory_space<smem>>
    %22 = vector.broadcast %21 : f32 to vector<1x128xf32>
    %23 = arith.mulf %20, %22 : vector<1x128xf32>
    %24 = arith.addf %13, %23 : vector<1x128xf32>
    %c2 = arith.constant 2 : index
    %25 = memref.load %arg1[%c2] : memref<43xf32, #tpu.memory_space<smem>>
    %26 = vector.broadcast %25 : f32 to vector<1x128xf32>
    %27 = arith.mulf %0, %26 : vector<1x128xf32>
    %c16 = arith.constant 16 : index
    %28 = memref.load %arg1[%c16] : memref<43xf32, #tpu.memory_space<smem>>
    %29 = vector.broadcast %28 : f32 to vector<1x128xf32>
    %30 = arith.addf %27, %29 : vector<1x128xf32>
    %31 = math.tanh %30 : vector<1x128xf32>
    %c30 = arith.constant 30 : index
    %32 = memref.load %arg1[%c30] : memref<43xf32, #tpu.memory_space<smem>>
    %33 = vector.broadcast %32 : f32 to vector<1x128xf32>
    %34 = arith.mulf %31, %33 : vector<1x128xf32>
    %35 = arith.addf %24, %34 : vector<1x128xf32>
    %c3 = arith.constant 3 : index
    %36 = memref.load %arg1[%c3] : memref<43xf32, #tpu.memory_space<smem>>
    %37 = vector.broadcast %36 : f32 to vector<1x128xf32>
    %38 = arith.mulf %0, %37 : vector<1x128xf32>
    %c17 = arith.constant 17 : index
    %39 = memref.load %arg1[%c17] : memref<43xf32, #tpu.memory_space<smem>>
    %40 = vector.broadcast %39 : f32 to vector<1x128xf32>
    %41 = arith.addf %38, %40 : vector<1x128xf32>
    %42 = math.tanh %41 : vector<1x128xf32>
    %c31 = arith.constant 31 : index
    %43 = memref.load %arg1[%c31] : memref<43xf32, #tpu.memory_space<smem>>
    %44 = vector.broadcast %43 : f32 to vector<1x128xf32>
    %45 = arith.mulf %42, %44 : vector<1x128xf32>
    %46 = arith.addf %35, %45 : vector<1x128xf32>
    %c4 = arith.constant 4 : index
    %47 = memref.load %arg1[%c4] : memref<43xf32, #tpu.memory_space<smem>>
    %48 = vector.broadcast %47 : f32 to vector<1x128xf32>
    %49 = arith.mulf %0, %48 : vector<1x128xf32>
    %c18 = arith.constant 18 : index
    %50 = memref.load %arg1[%c18] : memref<43xf32, #tpu.memory_space<smem>>
    %51 = vector.broadcast %50 : f32 to vector<1x128xf32>
    %52 = arith.addf %49, %51 : vector<1x128xf32>
    %53 = math.tanh %52 : vector<1x128xf32>
    %c32 = arith.constant 32 : index
    %54 = memref.load %arg1[%c32] : memref<43xf32, #tpu.memory_space<smem>>
    %55 = vector.broadcast %54 : f32 to vector<1x128xf32>
    %56 = arith.mulf %53, %55 : vector<1x128xf32>
    %57 = arith.addf %46, %56 : vector<1x128xf32>
    %c5 = arith.constant 5 : index
    %58 = memref.load %arg1[%c5] : memref<43xf32, #tpu.memory_space<smem>>
    %59 = vector.broadcast %58 : f32 to vector<1x128xf32>
    %60 = arith.mulf %0, %59 : vector<1x128xf32>
    %c19 = arith.constant 19 : index
    %61 = memref.load %arg1[%c19] : memref<43xf32, #tpu.memory_space<smem>>
    %62 = vector.broadcast %61 : f32 to vector<1x128xf32>
    %63 = arith.addf %60, %62 : vector<1x128xf32>
    %64 = math.tanh %63 : vector<1x128xf32>
    %c33 = arith.constant 33 : index
    %65 = memref.load %arg1[%c33] : memref<43xf32, #tpu.memory_space<smem>>
    %66 = vector.broadcast %65 : f32 to vector<1x128xf32>
    %67 = arith.mulf %64, %66 : vector<1x128xf32>
    %68 = arith.addf %57, %67 : vector<1x128xf32>
    %c6 = arith.constant 6 : index
    %69 = memref.load %arg1[%c6] : memref<43xf32, #tpu.memory_space<smem>>
    %70 = vector.broadcast %69 : f32 to vector<1x128xf32>
    %71 = arith.mulf %0, %70 : vector<1x128xf32>
    %c20 = arith.constant 20 : index
    %72 = memref.load %arg1[%c20] : memref<43xf32, #tpu.memory_space<smem>>
    %73 = vector.broadcast %72 : f32 to vector<1x128xf32>
    %74 = arith.addf %71, %73 : vector<1x128xf32>
    %75 = math.tanh %74 : vector<1x128xf32>
    %c34 = arith.constant 34 : index
    %76 = memref.load %arg1[%c34] : memref<43xf32, #tpu.memory_space<smem>>
    %77 = vector.broadcast %76 : f32 to vector<1x128xf32>
    %78 = arith.mulf %75, %77 : vector<1x128xf32>
    %79 = arith.addf %68, %78 : vector<1x128xf32>
    %c7 = arith.constant 7 : index
    %80 = memref.load %arg1[%c7] : memref<43xf32, #tpu.memory_space<smem>>
    %81 = vector.broadcast %80 : f32 to vector<1x128xf32>
    %82 = arith.mulf %0, %81 : vector<1x128xf32>
    %c21 = arith.constant 21 : index
    %83 = memref.load %arg1[%c21] : memref<43xf32, #tpu.memory_space<smem>>
    %84 = vector.broadcast %83 : f32 to vector<1x128xf32>
    %85 = arith.addf %82, %84 : vector<1x128xf32>
    %86 = math.tanh %85 : vector<1x128xf32>
    %c35 = arith.constant 35 : index
    %87 = memref.load %arg1[%c35] : memref<43xf32, #tpu.memory_space<smem>>
    %88 = vector.broadcast %87 : f32 to vector<1x128xf32>
    %89 = arith.mulf %86, %88 : vector<1x128xf32>
    %90 = arith.addf %79, %89 : vector<1x128xf32>
    %c8 = arith.constant 8 : index
    %91 = memref.load %arg1[%c8] : memref<43xf32, #tpu.memory_space<smem>>
    %92 = vector.broadcast %91 : f32 to vector<1x128xf32>
    %93 = arith.mulf %0, %92 : vector<1x128xf32>
    %c22 = arith.constant 22 : index
    %94 = memref.load %arg1[%c22] : memref<43xf32, #tpu.memory_space<smem>>
    %95 = vector.broadcast %94 : f32 to vector<1x128xf32>
    %96 = arith.addf %93, %95 : vector<1x128xf32>
    %97 = math.tanh %96 : vector<1x128xf32>
    %c36 = arith.constant 36 : index
    %98 = memref.load %arg1[%c36] : memref<43xf32, #tpu.memory_space<smem>>
    %99 = vector.broadcast %98 : f32 to vector<1x128xf32>
    %100 = arith.mulf %97, %99 : vector<1x128xf32>
    %101 = arith.addf %90, %100 : vector<1x128xf32>
    %c9 = arith.constant 9 : index
    %102 = memref.load %arg1[%c9] : memref<43xf32, #tpu.memory_space<smem>>
    %103 = vector.broadcast %102 : f32 to vector<1x128xf32>
    %104 = arith.mulf %0, %103 : vector<1x128xf32>
    %c23 = arith.constant 23 : index
    %105 = memref.load %arg1[%c23] : memref<43xf32, #tpu.memory_space<smem>>
    %106 = vector.broadcast %105 : f32 to vector<1x128xf32>
    %107 = arith.addf %104, %106 : vector<1x128xf32>
    %108 = math.tanh %107 : vector<1x128xf32>
    %c37 = arith.constant 37 : index
    %109 = memref.load %arg1[%c37] : memref<43xf32, #tpu.memory_space<smem>>
    %110 = vector.broadcast %109 : f32 to vector<1x128xf32>
    %111 = arith.mulf %108, %110 : vector<1x128xf32>
    %112 = arith.addf %101, %111 : vector<1x128xf32>
    %c10 = arith.constant 10 : index
    %113 = memref.load %arg1[%c10] : memref<43xf32, #tpu.memory_space<smem>>
    %114 = vector.broadcast %113 : f32 to vector<1x128xf32>
    %115 = arith.mulf %0, %114 : vector<1x128xf32>
    %c24 = arith.constant 24 : index
    %116 = memref.load %arg1[%c24] : memref<43xf32, #tpu.memory_space<smem>>
    %117 = vector.broadcast %116 : f32 to vector<1x128xf32>
    %118 = arith.addf %115, %117 : vector<1x128xf32>
    %119 = math.tanh %118 : vector<1x128xf32>
    %c38 = arith.constant 38 : index
    %120 = memref.load %arg1[%c38] : memref<43xf32, #tpu.memory_space<smem>>
    %121 = vector.broadcast %120 : f32 to vector<1x128xf32>
    %122 = arith.mulf %119, %121 : vector<1x128xf32>
    %123 = arith.addf %112, %122 : vector<1x128xf32>
    %c11 = arith.constant 11 : index
    %124 = memref.load %arg1[%c11] : memref<43xf32, #tpu.memory_space<smem>>
    %125 = vector.broadcast %124 : f32 to vector<1x128xf32>
    %126 = arith.mulf %0, %125 : vector<1x128xf32>
    %c25 = arith.constant 25 : index
    %127 = memref.load %arg1[%c25] : memref<43xf32, #tpu.memory_space<smem>>
    %128 = vector.broadcast %127 : f32 to vector<1x128xf32>
    %129 = arith.addf %126, %128 : vector<1x128xf32>
    %130 = math.tanh %129 : vector<1x128xf32>
    %c39 = arith.constant 39 : index
    %131 = memref.load %arg1[%c39] : memref<43xf32, #tpu.memory_space<smem>>
    %132 = vector.broadcast %131 : f32 to vector<1x128xf32>
    %133 = arith.mulf %130, %132 : vector<1x128xf32>
    %134 = arith.addf %123, %133 : vector<1x128xf32>
    %c12 = arith.constant 12 : index
    %135 = memref.load %arg1[%c12] : memref<43xf32, #tpu.memory_space<smem>>
    %136 = vector.broadcast %135 : f32 to vector<1x128xf32>
    %137 = arith.mulf %0, %136 : vector<1x128xf32>
    %c26 = arith.constant 26 : index
    %138 = memref.load %arg1[%c26] : memref<43xf32, #tpu.memory_space<smem>>
    %139 = vector.broadcast %138 : f32 to vector<1x128xf32>
    %140 = arith.addf %137, %139 : vector<1x128xf32>
    %141 = math.tanh %140 : vector<1x128xf32>
    %c40 = arith.constant 40 : index
    %142 = memref.load %arg1[%c40] : memref<43xf32, #tpu.memory_space<smem>>
    %143 = vector.broadcast %142 : f32 to vector<1x128xf32>
    %144 = arith.mulf %141, %143 : vector<1x128xf32>
    %145 = arith.addf %134, %144 : vector<1x128xf32>
    %c13 = arith.constant 13 : index
    %146 = memref.load %arg1[%c13] : memref<43xf32, #tpu.memory_space<smem>>
    %147 = vector.broadcast %146 : f32 to vector<1x128xf32>
    %148 = arith.mulf %0, %147 : vector<1x128xf32>
    %c27 = arith.constant 27 : index
    %149 = memref.load %arg1[%c27] : memref<43xf32, #tpu.memory_space<smem>>
    %150 = vector.broadcast %149 : f32 to vector<1x128xf32>
    %151 = arith.addf %148, %150 : vector<1x128xf32>
    %152 = math.tanh %151 : vector<1x128xf32>
    %c41 = arith.constant 41 : index
    %153 = memref.load %arg1[%c41] : memref<43xf32, #tpu.memory_space<smem>>
    %154 = vector.broadcast %153 : f32 to vector<1x128xf32>
    %155 = arith.mulf %152, %154 : vector<1x128xf32>
    %156 = arith.addf %145, %155 : vector<1x128xf32>
    %c0_2 = arith.constant 0 : index
    %c0_3 = arith.constant 0 : index
    %157 = vector.load %arg3[%c0_2, %c0_3] : memref<1x128xf32, #tpu.memory_space<vmem>>, vector<1x128xf32>
    tpu.vector_store %arg3[%c0_2, %c0_3], %156 {strides = array<i32>} : memref<1x128xf32, #tpu.memory_space<vmem>>, vector<1x128xf32>,
    return
  }
  func.func @transform_0(%arg0: i32) -> i32 {
    %c0_i32 = arith.constant 0 : i32
    %c0_i32_0 = arith.constant 0 : i32
    return %c0_i32 : i32
  }
  func.func @transform_1(%arg0: i32) -> (i32, i32) {
    %c0_i32 = arith.constant 0 : i32
    %c0_i32_0 = arith.constant 0 : i32
    return %arg0, %c0_i32 : i32, i32
  }
  func.func @transform_2(%arg0: i32) -> (i32, i32) {
    %c0_i32 = arith.constant 0 : i32
    %c0_i32_0 = arith.constant 0 : i32
    return %arg0, %c0_i32 : i32, i32
  }
}

</mosaic_0001>

<bundles_post_ra>
// kernel: tpu_custom_call.1
= control target key start
LH: loop header
LB: loop body
LE: loop exit
PB: predicated region body
PF: predicated region fallthrough
CT: control target
= control target key end

     0   :  { %7 = vsyncpa [#allocation4], 0  ;;  %s460_s0 = inlined_call_operand.hbm [shape: f32[43], index: 0, kind: input, shape index: {}]   ;;  %s461_s1 = inlined_call_operand.vmem [shape: f32[1,128], index: 1, kind: input, shape index: {}]   ;;  %s462_s2 = inlined_call_operand.hbm [shape: f32[1,128], index: 2, kind: output, shape index: {}]  }
   0x1   :  { %8 = vsyncpa [#allocation3], 0  ;;  %s268_s11 = scalar_lea.hbm %s460_s0, 16 }
   0x2   :  { %p269_p0 = scmp.ne.s32.totalorder %s460_s0, %s268_s11  ;;  %p272_p1 = scmp.lt.u32.totalorder %s268_s11, %s460_s0 }
   0x4   :  { %p274_p2 = pnand %p272_p1, %p269_p0 }
   0x6   :  { %277 = shalt.err (!%p274_p2)
}
   0x7   :  { %s304_s16 = smov [#allocation2]  }
   0x8   :  { %16 = dma.hbm_to_smem %s460_s0, 16, %s304_s16, [#allocation4]  }
   0x9   :  { %300 = dma.done.wait [#allocation4], 16  }
   0xa   :  { %301 = vsyncadd [#allocation4], 4294967280 }
   0xb   :  { %22 = sfence }
   0xc   :  { %s24_s19 = sld [smem:[#allocation2]]  ;;  %s196_s20 = sld [smem:[#allocation2 + $0xe]]  ;;  %v336_v0 = vld [vmem:[%s461_s1] sm:$0x1] }
   0xd   :  { %s199_s21 = sld [smem:[#allocation2 + $0x1]]  ;;  %s200_s22 = sld [smem:[#allocation2 + $0xf]] }
   0xe   :  { %s202_s23 = sld [smem:[#allocation2 + $0x2]]  ;;  %s203_s26 = sld [smem:[#allocation2 + $0x10]] }
   0xf   :  { %s205_s27 = sld [smem:[#allocation2 + $0x3]]  ;;  %s338_s28 = sld [smem:[#allocation2 + $0x11]] }
  0x10   :  { %s208_s0 = sld [smem:[#allocation2 + $0x4]]  ;;  %s343_s30 = sld [smem:[#allocation2 + $0x12]] }
  0x11   :  { %s341_s29 = sld [smem:[#allocation2 + $0x1c]]  ;;  %s345_s3 = sld [smem:[#allocation2 + $0x5]] }
  0x12   :  { %v25_v1 = vstv %s24_s19  ;;  %v28_v2 = vstv %s196_s20  ;;  %s347_s1 = sld [smem:[#allocation2 + $0x13]]  ;;  %s349_s4 = sld [smem:[#allocation2 + $0x2a]] }
  0x13   :  { %v26_v3 = vmul.f32 %v25_v1, %v336_v0  ;;  %v38_v4 = vstv %s199_s21  ;;  %v41_v5 = vstv %s200_s22  ;;  %s352_s5 = sld [smem:[#allocation2 + $0x6]]  ;;  %s354_s6 = sld [smem:[#allocation2 + $0x1d]] }
  0x14   :  { %v39_v7 = vmul.f32 %v38_v4, %v336_v0  ;;  %v49_v8 = vstv %s202_s23  ;;  %v52_v10 = vstv %s203_s26  ;;  %s357_s7 = sld [smem:[#allocation2 + $0x14]]  ;;  %s360_s8 = sld [smem:[#allocation2 + $0x7]] }
  0x15   :  { %v29_v6 = vadd.f32 %v28_v2, %v26_v3  ;;  %v50_v9 = vmul.f32 %v49_v8, %v336_v0  ;;  %v60_v12 = vstv %s205_s27  ;;  %v63_v13 = vstv %s338_s28  ;;  %s362_s9 = sld [smem:[#allocation2 + $0x15]]  ;;  %s365_s10 = sld [smem:[#allocation2 + $0x8]] }
  0x16   :  { %v42_v11 = vadd.f32 %v41_v5, %v39_v7  ;;  %v61_v15 = vmul.f32 %v60_v12, %v336_v0  ;;  %v71_v16 = vstv %s208_s0  ;;  %s367_s11 = sld [smem:[#allocation2 + $0x1e]]  ;;  %v74_v18 = vstv %s343_s30  ;;  %s375_s13 = sld [smem:[#allocation2 + $0x9]] }
  0x17   :  { %240 = vtanh.f32 %v29_v6  ;;  %v53_v14 = vadd.f32 %v52_v10, %v50_v9  ;;  %v72_v17 = vmul.f32 %v71_v16, %v336_v0  ;;  %s371_s12 = sld [smem:[#allocation2 + $0x16]]  ;;  %v82_v20 = vstv %s345_s3  ;;  %s377_s14 = sld [smem:[#allocation2 + $0x17]] }
  0x18   :  { %242 = vtanh.f32 %v42_v11  ;;  %v64_v19 = vadd.f32 %v63_v13, %v61_v15  ;;  %v85_v21 = vstv %s347_s1  ;;  %s379_s15 = sld [smem:[#allocation2 + $0x1f]]  ;;  %v83_v23 = vmul.f32 %v82_v20, %v336_v0  ;;  %s383_s16 = sld [smem:[#allocation2 + $0xa]] }
  0x19   :  { %244 = vtanh.f32 %v53_v14  ;;  %v75_v22 = vadd.f32 %v74_v18, %v72_v17  ;;  %v93_v24 = vstv %s352_s5  ;;  %v32_v25 = vstv %s341_s29  ;;  %s386_s17 = sld [smem:[#allocation2 + $0x20]]  ;;  %s394_s19 = sld [smem:[#allocation2 + $0xb]] }
  0x1a   :  { %246 = vtanh.f32 %v64_v19  ;;  %v94_v26 = vmul.f32 %v93_v24, %v336_v0  ;;  %v96_v27 = vstv %s357_s7  ;;  %s390_s18 = sld [smem:[#allocation2 + $0x18]]  ;;  %v86_v28 = vadd.f32 %v85_v21, %v83_v23  ;;  %s396_s20 = sld [smem:[#allocation2 + $0x19]] }
  0x1b   :  { %248 = vtanh.f32 %v75_v22  ;;  %v104_v29 = vstv %s360_s8  ;;  %v107_v30 = vstv %s362_s9  ;;  %v35_v31 = vstv %s349_s4  ;;  %s399_s21 = sld [smem:[#allocation2 + $0x21]]  ;;  %s403_s22 = sld [smem:[#allocation2 + $0xc]] }
  0x1c   :  { %v97_v32 = vadd.f32 %v96_v27, %v94_v26  ;;  %v105_v33 = vmul.f32 %v104_v29, %v336_v0  ;;  %v115_v34 = vstv %s365_s10  ;;  %v45_v35 = vstv %s354_s6  ;;  %s408_s23 = sld [smem:[#allocation2 + $0x1a]]  ;;  %s414_s25 = sld [smem:[#allocation2 + $0xd]] }
  0x1d   :  { %250 = vtanh.f32 %v86_v28  ;;  %v116_v36 = vmul.f32 %v115_v34, %v336_v0  ;;  %v118_v37 = vstv %s371_s12  ;;  %s410_s24 = sld [smem:[#allocation2 + $0x22]]  ;;  %v126_v39 = vstv %s375_s13  ;;  %s419_s26 = sld [smem:[#allocation2 + $0x1b]] }
  0x1e   :  { %252 = vtanh.f32 %v97_v32  ;;  %v108_v38 = vadd.f32 %v107_v30, %v105_v33  ;;  %v129_v40 = vstv %s377_s14  ;;  %v56_v42 = vstv %s367_s11  ;;  %s424_s27 = sld [smem:[#allocation2 + $0x23]]  ;;  %s429_s28 = sld [smem:[#allocation2 + $0x24]] }
  0x1f   :  { %v119_v43 = vadd.f32 %v118_v37, %v116_v36  ;;  %v127_v44 = vmul.f32 %v126_v39, %v336_v0  ;;  %v137_v45 = vstv %s383_s16  ;;  %v67_v50 = vstv %s379_s15  ;;  %s434_s0 = sld [smem:[#allocation2 + $0x25]]  ;;  %s440_s29 = sld [smem:[#allocation2 + $0x26]] }
  0x20   :  { %254 = vtanh.f32 %v108_v38  ;;  %v138_v47 = vmul.f32 %v137_v45, %v336_v0  ;;  %v140_v48 = vstv %s390_s18  ;;  %v148_v52 = vstv %s394_s19  ;;  %s231_s30 = sld [smem:[#allocation2 + $0x27]]  ;;  %s234_s3 = sld [smem:[#allocation2 + $0x28]] }
  0x21   :  { %v241_v41 = vpop.eup %240  ;;  %256 = vtanh.f32 %v119_v43  ;;  %v130_v51 = vadd.f32 %v129_v40, %v127_v44  ;;  %v149_v57 = vmul.f32 %v148_v52, %v336_v0  ;;  %v78_v59 = vstv %s386_s17  ;;  %s237_s1 = sld [smem:[#allocation2 + $0x29]]  ;;  %s305_s4 = smov [#allocation5]  }
  0x22   :  { %v33_v46 = vmul.f32 %v241_v41, %v32_v25  ;;  %v243_v49 = vpop.eup %242  ;;  %v141_v56 = vadd.f32 %v140_v48, %v138_v47  ;;  %v151_v60 = vstv %s396_s20  ;;  %v89_v63 = vstv %s399_s21  ;;  %s187_s5 = sshll.u32 %s305_s4, 4  ;;  %s188_s5 = int_to_ptr.vmem [resolvable:$true] %s187_s5 }
  0x23   :  { %v245_v53 = vpop.eup %244  ;;  %v46_v55 = vmul.f32 %v243_v49, %v45_v35  ;;  %258 = vtanh.f32 %v130_v51  ;;  %v152_v1 = vadd.f32 %v151_v60, %v149_v57  ;;  %v159_v2 = vstv %s403_s22  ;;  %s278_s6 = scalar_lea.vmem %s188_s5, 16  ;;  %s282_s7 = scalar_lea.vmem %s188_s5, 32 }
  0x24   :  { %v36_v54 = vadd.f32 %v35_v31, %v33_v46  ;;  %v57_v58 = vmul.f32 %v245_v53, %v56_v42  ;;  %v247_v61 = vpop.eup %246  ;;  %260 = vtanh.f32 %v141_v56  ;;  %v160_v5 = vmul.f32 %v159_v2, %v336_v0  ;;  %p279_p3 = scmp.ne.s32.totalorder %s188_s5, %s278_s6  ;;  %p283_p4 = scmp.lt.s32.totalorder %s188_s5, %s188_s5 }
  0x25   :  { %v249_v3 = vpop.eup %248  ;;  %v68_v4 = vmul.f32 %v247_v61, %v67_v50  ;;  %v162_v6 = vstv %s408_s23  ;;  %v100_v9 = vstv %s410_s24  ;;  %v170_v10 = vstv %s414_s25  ;;  %p284_p5 = scmp.lt.s32.totalorder %s282_s7, %s278_s6 }
  0x26   :  { %v47_v62 = vadd.f32 %v46_v55, %v36_v54  ;;  %v79_v8 = vmul.f32 %v249_v3, %v78_v59  ;;  %262 = vtanh.f32 %v152_v1  ;;  %v163_v12 = vadd.f32 %v162_v6, %v160_v5 }
  0x27   :  { %v251_v11 = vpop.eup %250  ;;  %v171_v13 = vmul.f32 %v170_v10, %v336_v0  ;;  %v173_v14 = vstv %s419_s26  ;;  %v111_v18 = vstv %s424_s27  ;;  %v122_v24 = vstv %s429_s28  ;;  %p285_p6 = por %p284_p5, %p283_p4 }
  0x28   :  { %v58_v7 = vadd.f32 %v57_v58, %v47_v62  ;;  %v253_v15 = vpop.eup %252  ;;  %v90_v17 = vmul.f32 %v251_v11, %v89_v63  ;;  %264 = vtanh.f32 %v163_v12  ;;  %v133_v27 = vstv %s434_s0 }
  0x29   :  { %v174_v19 = vadd.f32 %v173_v14, %v171_v13  ;;  %v101_v22 = vmul.f32 %v253_v15, %v100_v9  ;;  %v144_v31 = vstv %s440_s29  ;;  %v155_v35 = vstv %s231_s30  ;;  %p286_p7 = pnand %p285_p6, %p279_p3 }
  0x2a   :  { %v69_v16 = vadd.f32 %v68_v4, %v58_v7  ;;  %v255_v20 = vpop.eup %254  ;;  %v166_v39 = vstv %s234_s3  ;;  %v177_v43 = vstv %s237_s1 }
  0x2b   :  { %v257_v23 = vpop.eup %256  ;;  %266 = vtanh.f32 %v174_v19  ;;  %v112_v26 = vmul.f32 %v255_v20, %v111_v18 }
  0x2c   :  { %v80_v21 = vadd.f32 %v79_v8, %v69_v16  ;;  %v123_v29 = vmul.f32 %v257_v23, %v122_v24 }
  0x2d   :  { %v259_v0 = vpop.eup %258 }
  0x2e   :  { %v91_v25 = vadd.f32 %v90_v17, %v80_v21  ;;  %v261_v30 = vpop.eup %260  ;;  %v134_v33 = vmul.f32 %v259_v0, %v133_v27 }
  0x2f   :  { %v145_v37 = vmul.f32 %v261_v30, %v144_v31 }
  0x30   :  { %v102_v28 = vadd.f32 %v101_v22, %v91_v25  ;;  %v263_v34 = vpop.eup %262 }
  0x31   :  { %v156_v41 = vmul.f32 %v263_v34, %v155_v35 }
  0x32   :  { %v113_v32 = vadd.f32 %v112_v26, %v102_v28  ;;  %v265_v38 = vpop.eup %264 }
  0x33   :  { %v167_v45 = vmul.f32 %v265_v38, %v166_v39 }
  0x34   :  { %v124_v36 = vadd.f32 %v123_v29, %v113_v32 }
  0x35   :  { %v267_v42 = vpop.eup %266 }
  0x36   :  { %v135_v40 = vadd.f32 %v134_v33, %v124_v36  ;;  %v178_v47 = vmul.f32 %v267_v42, %v177_v43 }
  0x38   :  { %v146_v44 = vadd.f32 %v145_v37, %v135_v40 }
  0x3a   :  { %v157_v46 = vadd.f32 %v156_v41, %v146_v44 }
  0x3c   :  { %v168_v48 = vadd.f32 %v167_v45, %v157_v46 }
  0x3e   :  { %v179_v49 = vadd.f32 %v178_v47, %v168_v48 }
  0x40   :  { %180 = vst [vmem:[#allocation5] sm:$0x1] %v179_v49 }
  0x41   :  { %289 = shalt.err (!%p286_p7)
}
  0x42   :  { %s290_s10 = scalar_lea.hbm %s462_s2, 16 }
  0x43   :  { %p291_p8 = scmp.ne.s32.totalorder %s462_s2, %s290_s10  ;;  %p294_p9 = scmp.lt.u32.totalorder %s290_s10, %s462_s2 }
  0x45   :  { %p296_p10 = pnand %p294_p9, %p291_p8 }
  0x47   :  { %299 = shalt.err (!%p296_p10)
}
  0x48   :  { %190 = dma.vmem_to_hbm [thread:$0]  %s188_s5, 16, %s462_s2, [#allocation3]  }
  0x49   :  { %302 = dma.done.wait [#allocation3], 16  }
  0x4a   :  { %303 = vsyncadd [#allocation3], 4294967280 }
  0x4b   :  { %194 = vsyncpa [#allocation3], 1 }
  0x4c   :  { %195 = vsyncpa [#allocation4], 1 }

</bundles_post_ra>
